<compile_context>
chip_gen: v7x
topology: tpu7x:2x2x1
jax: 0.10.0
libtpu: 0.0.40
codegen_flags: <defaults>
</compile_context>

<pallas_src>
import jax
import jax.numpy as jnp
from jax.experimental import pallas as pl
from jax.experimental.pallas import tpu as pltpu


_NEG_SLOPE = 0.01  # torch.nn.LeakyReLU default negative_slope


def _round_up(n, m):
    return ((n + m - 1) // m) * m


def mlp6_kernel(x_ref,
                w1_ref, b1_ref, w2_ref, b2_ref, w3_ref, b3_ref,
                w4_ref, b4_ref, w5_ref, b5_ref, w6_ref, b6_ref,
                o_ref):
    h = x_ref[...]  # (TB, IN_PAD) float32
    layers = ((w1_ref, b1_ref), (w2_ref, b2_ref), (w3_ref, b3_ref),
              (w4_ref, b4_ref), (w5_ref, b5_ref), (w6_ref, b6_ref))
    n_layers = len(layers)
    for li, (w_ref, b_ref) in enumerate(layers):
        # bf16 MXU matmul with f32 accumulation; bias/activation math stays f32.
        z = jnp.dot(h.astype(jnp.bfloat16), w_ref[...],
                    preferred_element_type=jnp.float32) + b_ref[...]
        if li < n_layers - 1:
            h = jnp.where(z > 0, z, _NEG_SLOPE * z)      # LeakyReLU
        else:
            h = jax.nn.sigmoid(z)                        # final Sigmoid
    o_ref[...] = h


def mlp6_forward(x, params, *, batch_tile=128):
    """x: (B, input_size) float32.  params: list of 6 (W_T, b) with W_T (in, out)."""
    B, in_features = x.shape
    num_classes = params[-1][0].shape[1]
    n_layers = len(params)

    # Feature widths along the chain and their lane-padded (multiple-of-128) sizes.
    widths = [in_features] + [w.shape[1] for (w, _) in params]
    pad = [max(128, _round_up(w, 128)) for w in widths]

    # Batch tile (sublane aligned, <=128 rows to keep live activations in vregs),
    # pad batch to a multiple of the tile.
    tb = min(batch_tile, max(8, _round_up(B, 8)))
    b_pad = _round_up(B, tb)

    # Zero-pad x; pad weights (bf16) and biases (f32) to lane-aligned shapes.
    # Padded columns carry exact zeros through every LeakyReLU layer, so the real
    # output columns are unaffected; padded outputs are sliced away below.
    x_p = jnp.zeros((b_pad, pad[0]), jnp.float32).at[:B, :in_features].set(x)

    flat_inputs = [x_p]
    for li, (w, b) in enumerate(params):
        fi, fo = w.shape
        w_p = jnp.zeros((pad[li], pad[li + 1]), jnp.bfloat16)
        w_p = w_p.at[:fi, :fo].set(w.astype(jnp.bfloat16))
        b_p = jnp.zeros((1, pad[li + 1]), jnp.float32).at[:, :fo].set(b)
        flat_inputs.append(w_p)
        flat_inputs.append(b_p)

    grid = (b_pad // tb,)

    # x / out: gridded batch tiles.  Weights / biases: full-array blocks with a
    # constant index_map -> resident in VMEM across the whole grid.
    in_specs = [pl.BlockSpec((tb, pad[0]), lambda i: (i, 0))]
    for li in range(n_layers):
        w_shape = flat_inputs[1 + 2 * li].shape
        b_shape = flat_inputs[2 + 2 * li].shape
        in_specs.append(pl.BlockSpec(w_shape, lambda i: (0, 0)))
        in_specs.append(pl.BlockSpec(b_shape, lambda i: (0, 0)))
    out_specs = pl.BlockSpec((tb, pad[-1]), lambda i: (i, 0))

    # Advisory cost estimate for XLA's scheduler.
    flops = 2 * b_pad * sum(pad[i] * pad[i + 1] for i in range(n_layers))
    weight_bytes = sum(2 * pad[i] * pad[i + 1] + 4 * pad[i + 1]
                       for i in range(n_layers))
    bytes_accessed = 4 * b_pad * pad[0] + 4 * b_pad * pad[-1] + weight_bytes
    cost = pl.CostEstimate(flops=int(flops),
                           bytes_accessed=int(bytes_accessed),
                           transcendentals=int(b_pad * pad[-1]))

    out_p = pl.pallas_call(
        mlp6_kernel,
        out_shape=jax.ShapeDtypeStruct((b_pad, pad[-1]), jnp.float32),
        grid=grid,
        in_specs=in_specs,
        out_specs=out_specs,
        compiler_params=pltpu.CompilerParams(
            dimension_semantics=("parallel",),
            vmem_limit_bytes=48 * 1024 * 1024,   # headroom vs v7x's 64 MiB VMEM
        ),
        cost_estimate=cost,
    )(*flat_inputs)

    return out_p[:B, :num_classes]


def init_params(key, input_size, num_classes=1):
    """Deterministic init matching MLP_6's layer shapes.

    Returns list of (W_T, b) with W_T shape (in, out) and b shape (1, out)."""
    dims = [
        (input_size, input_size * 5),
        (input_size * 5, input_size * 5),
        (input_size * 5, input_size * 2),
        (input_size * 2, input_size),
        (input_size, input_size // 2),
        (input_size // 2, num_classes),
    ]
    params = []
    for fan_in, fan_out in dims:
        key, kw, kb = jax.random.split(key, 3)
        bound = 1.0 / jnp.sqrt(float(fan_in))
        # PyTorch nn.Linear default: U(-1/sqrt(fan_in), 1/sqrt(fan_in)) for W and b.
        w_t = jax.random.uniform(kw, (fan_in, fan_out), jnp.float32, -bound, bound)
        b = jax.random.uniform(kb, (1, fan_out), jnp.float32, -bound, bound)
        params.append((w_t, b))
    return params


def reference_forward(x, params):
    """Pure f32 reference matching the PyTorch module."""
    h = x
    for i, (w, b) in enumerate(params):
        h = h @ w + b
        if i < len(params) - 1:
            h = jnp.where(h > 0, h, _NEG_SLOPE * h)
        else:
            h = jax.nn.sigmoid(h)
    return h


if __name__ == "__main__":
    input_size = 32
    num_classes = 1
    batch = 8

    key = jax.random.PRNGKey(0)
    key, kx = jax.random.split(key)
    x = jax.random.normal(kx, (batch, input_size), jnp.float32)

    params = init_params(key, input_size, num_classes)

    out = mlp6_forward(x, params)
    out = jax.block_until_ready(out)

    ref = reference_forward(x, params)
    assert out.shape == (batch, num_classes), out.shape
    # bf16 matmul operands (f32 accumulation) -> compare with loosened tolerance.
    max_err = float(jnp.max(jnp.abs(out - ref)))
    assert jnp.allclose(out, ref, atol=2e-2, rtol=2e-2), \
        f"mismatch: max abs err {max_err}"

    print("KERNEL_OK")
</pallas_src>

<mosaic_0001>
module attributes {stable_mosaic.version = 11 : i64} {
  func.func @mlp6_kernel(%arg0: i32, %arg1: memref<8x128xf32, #tpu.memory_space<vmem>>, %arg2: memref<128x256xbf16, #tpu.memory_space<vmem>>, %arg3: memref<1x256xf32, #tpu.memory_space<vmem>>, %arg4: memref<256x256xbf16, #tpu.memory_space<vmem>>, %arg5: memref<1x256xf32, #tpu.memory_space<vmem>>, %arg6: memref<256x128xbf16, #tpu.memory_space<vmem>>, %arg7: memref<1x128xf32, #tpu.memory_space<vmem>>, %arg8: memref<128x128xbf16, #tpu.memory_space<vmem>>, %arg9: memref<1x128xf32, #tpu.memory_space<vmem>>, %arg10: memref<128x128xbf16, #tpu.memory_space<vmem>>, %arg11: memref<1x128xf32, #tpu.memory_space<vmem>>, %arg12: memref<128x128xbf16, #tpu.memory_space<vmem>>, %arg13: memref<1x128xf32, #tpu.memory_space<vmem>>, %arg14: memref<8x128xf32, #tpu.memory_space<vmem>>) attributes {dimension_semantics = [#tpu.dimension_semantics<parallel>], iteration_bounds = array<i64: 1>, scalar_prefetch = 0 : i64, scratch_operands = 0 : i64, tpu.core_type = #tpu.core_type<tc>, window_params = [{transform_indices = @transform_0, window_bounds = array<i64: 8, 128>}, {pipeline_mode = #tpu.pipeline_mode<synchronous>, transform_indices = @transform_1, window_bounds = array<i64: 128, 256>}, {pipeline_mode = #tpu.pipeline_mode<synchronous>, transform_indices = @transform_2, window_bounds = array<i64: 1, 256>}, {pipeline_mode = #tpu.pipeline_mode<synchronous>, transform_indices = @transform_3, window_bounds = array<i64: 256, 256>}, {pipeline_mode = #tpu.pipeline_mode<synchronous>, transform_indices = @transform_4, window_bounds = array<i64: 1, 256>}, {pipeline_mode = #tpu.pipeline_mode<synchronous>, transform_indices = @transform_5, window_bounds = array<i64: 256, 128>}, {pipeline_mode = #tpu.pipeline_mode<synchronous>, transform_indices = @transform_6, window_bounds = array<i64: 1, 128>}, {pipeline_mode = #tpu.pipeline_mode<synchronous>, transform_indices = @transform_7, window_bounds = array<i64: 128, 128>}, {pipeline_mode = #tpu.pipeline_mode<synchronous>, transform_indices = @transform_8, window_bounds = array<i64: 1, 128>}, {pipeline_mode = #tpu.pipeline_mode<synchronous>, transform_indices = @transform_9, window_bounds = array<i64: 128, 128>}, {pipeline_mode = #tpu.pipeline_mode<synchronous>, transform_indices = @transform_10, window_bounds = array<i64: 1, 128>}, {pipeline_mode = #tpu.pipeline_mode<synchronous>, transform_indices = @transform_11, window_bounds = array<i64: 128, 128>}, {pipeline_mode = #tpu.pipeline_mode<synchronous>, transform_indices = @transform_12, window_bounds = array<i64: 1, 128>}, {transform_indices = @transform_13, window_bounds = array<i64: 8, 128>}]} {
    %c0 = arith.constant 0 : index
    %c0_0 = arith.constant 0 : index
    %0 = vector.load %arg1[%c0, %c0_0] : memref<8x128xf32, #tpu.memory_space<vmem>>, vector<8x128xf32>
    %1 = arith.truncf %0 : vector<8x128xf32> to vector<8x128xbf16>
    %c0_1 = arith.constant 0 : index
    %c0_2 = arith.constant 0 : index
    %2 = vector.load %arg2[%c0_1, %c0_2] : memref<128x256xbf16, #tpu.memory_space<vmem>>, vector<128x256xbf16>
    %cst = arith.constant dense<0.000000e+00> : vector<8x256xf32>
    %3 = tpu.matmul %1, %2, %cst {dimension_numbers = #tpu.dot_dimension_numbers<[1], [0], [0], [1], [0, 0, 1, 1], [], []>} : vector<8x128xbf16>, vector<128x256xbf16>, vector<8x256xf32> -> vector<8x256xf32>
    %c0_3 = arith.constant 0 : index
    %c0_4 = arith.constant 0 : index
    %4 = vector.load %arg3[%c0_3, %c0_4] : memref<1x256xf32, #tpu.memory_space<vmem>>, vector<1x256xf32>
    %5 = vector.broadcast %4 : vector<1x256xf32> to vector<8x256xf32>
    %6 = arith.addf %3, %5 : vector<8x256xf32>
    %cst_5 = arith.constant 0.000000e+00 : f32
    %7 = vector.broadcast %cst_5 : f32 to vector<8x256xf32>
    %8 = arith.cmpf ogt, %6, %7 : vector<8x256xf32>
    %cst_6 = arith.constant 0.00999999977 : f32
    %9 = vector.broadcast %cst_6 : f32 to vector<8x256xf32>
    %10 = arith.mulf %9, %6 : vector<8x256xf32>
    %11 = arith.select %8, %6, %10 : vector<8x256xi1>, vector<8x256xf32>
    %12 = arith.truncf %11 : vector<8x256xf32> to vector<8x256xbf16>
    %c0_7 = arith.constant 0 : index
    %c0_8 = arith.constant 0 : index
    %13 = vector.load %arg4[%c0_7, %c0_8] : memref<256x256xbf16, #tpu.memory_space<vmem>>, vector<256x256xbf16>
    %cst_9 = arith.constant dense<0.000000e+00> : vector<8x256xf32>
    %14 = tpu.matmul %12, %13, %cst_9 {dimension_numbers = #tpu.dot_dimension_numbers<[1], [0], [0], [1], [0, 0, 1, 1], [], []>} : vector<8x256xbf16>, vector<256x256xbf16>, vector<8x256xf32> -> vector<8x256xf32>
    %c0_10 = arith.constant 0 : index
    %c0_11 = arith.constant 0 : index
    %15 = vector.load %arg5[%c0_10, %c0_11] : memref<1x256xf32, #tpu.memory_space<vmem>>, vector<1x256xf32>
    %16 = vector.broadcast %15 : vector<1x256xf32> to vector<8x256xf32>
    %17 = arith.addf %14, %16 : vector<8x256xf32>
    %cst_12 = arith.constant 0.000000e+00 : f32
    %18 = vector.broadcast %cst_12 : f32 to vector<8x256xf32>
    %19 = arith.cmpf ogt, %17, %18 : vector<8x256xf32>
    %cst_13 = arith.constant 0.00999999977 : f32
    %20 = vector.broadcast %cst_13 : f32 to vector<8x256xf32>
    %21 = arith.mulf %20, %17 : vector<8x256xf32>
    %22 = arith.select %19, %17, %21 : vector<8x256xi1>, vector<8x256xf32>
    %23 = arith.truncf %22 : vector<8x256xf32> to vector<8x256xbf16>
    %c0_14 = arith.constant 0 : index
    %c0_15 = arith.constant 0 : index
    %24 = vector.load %arg6[%c0_14, %c0_15] : memref<256x128xbf16, #tpu.memory_space<vmem>>, vector<256x128xbf16>
    %cst_16 = arith.constant dense<0.000000e+00> : vector<8x128xf32>
    %25 = tpu.matmul %23, %24, %cst_16 {dimension_numbers = #tpu.dot_dimension_numbers<[1], [0], [0], [1], [0, 0, 1, 1], [], []>} : vector<8x256xbf16>, vector<256x128xbf16>, vector<8x128xf32> -> vector<8x128xf32>
    %c0_17 = arith.constant 0 : index
    %c0_18 = arith.constant 0 : index
    %26 = vector.load %arg7[%c0_17, %c0_18] : memref<1x128xf32, #tpu.memory_space<vmem>>, vector<1x128xf32>
    %27 = vector.broadcast %26 : vector<1x128xf32> to vector<8x128xf32>
    %28 = arith.addf %25, %27 : vector<8x128xf32>
    %cst_19 = arith.constant 0.000000e+00 : f32
    %29 = vector.broadcast %cst_19 : f32 to vector<8x128xf32>
    %30 = arith.cmpf ogt, %28, %29 : vector<8x128xf32>
    %cst_20 = arith.constant 0.00999999977 : f32
    %31 = vector.broadcast %cst_20 : f32 to vector<8x128xf32>
    %32 = arith.mulf %31, %28 : vector<8x128xf32>
    %33 = arith.select %30, %28, %32 : vector<8x128xi1>, vector<8x128xf32>
    %34 = arith.truncf %33 : vector<8x128xf32> to vector<8x128xbf16>
    %c0_21 = arith.constant 0 : index
    %c0_22 = arith.constant 0 : index
    %35 = vector.load %arg8[%c0_21, %c0_22] : memref<128x128xbf16, #tpu.memory_space<vmem>>, vector<128x128xbf16>
    %cst_23 = arith.constant dense<0.000000e+00> : vector<8x128xf32>
    %36 = tpu.matmul %34, %35, %cst_23 {dimension_numbers = #tpu.dot_dimension_numbers<[1], [0], [0], [1], [0, 0, 1, 1], [], []>} : vector<8x128xbf16>, vector<128x128xbf16>, vector<8x128xf32> -> vector<8x128xf32>
    %c0_24 = arith.constant 0 : index
    %c0_25 = arith.constant 0 : index
    %37 = vector.load %arg9[%c0_24, %c0_25] : memref<1x128xf32, #tpu.memory_space<vmem>>, vector<1x128xf32>
    %38 = vector.broadcast %37 : vector<1x128xf32> to vector<8x128xf32>
    %39 = arith.addf %36, %38 : vector<8x128xf32>
    %cst_26 = arith.constant 0.000000e+00 : f32
    %40 = vector.broadcast %cst_26 : f32 to vector<8x128xf32>
    %41 = arith.cmpf ogt, %39, %40 : vector<8x128xf32>
    %cst_27 = arith.constant 0.00999999977 : f32
    %42 = vector.broadcast %cst_27 : f32 to vector<8x128xf32>
    %43 = arith.mulf %42, %39 : vector<8x128xf32>
    %44 = arith.select %41, %39, %43 : vector<8x128xi1>, vector<8x128xf32>
    %45 = arith.truncf %44 : vector<8x128xf32> to vector<8x128xbf16>
    %c0_28 = arith.constant 0 : index
    %c0_29 = arith.constant 0 : index
    %46 = vector.load %arg10[%c0_28, %c0_29] : memref<128x128xbf16, #tpu.memory_space<vmem>>, vector<128x128xbf16>
    %cst_30 = arith.constant dense<0.000000e+00> : vector<8x128xf32>
    %47 = tpu.matmul %45, %46, %cst_30 {dimension_numbers = #tpu.dot_dimension_numbers<[1], [0], [0], [1], [0, 0, 1, 1], [], []>} : vector<8x128xbf16>, vector<128x128xbf16>, vector<8x128xf32> -> vector<8x128xf32>
    %c0_31 = arith.constant 0 : index
    %c0_32 = arith.constant 0 : index
    %48 = vector.load %arg11[%c0_31, %c0_32] : memref<1x128xf32, #tpu.memory_space<vmem>>, vector<1x128xf32>
    %49 = vector.broadcast %48 : vector<1x128xf32> to vector<8x128xf32>
    %50 = arith.addf %47, %49 : vector<8x128xf32>
    %cst_33 = arith.constant 0.000000e+00 : f32
    %51 = vector.broadcast %cst_33 : f32 to vector<8x128xf32>
    %52 = arith.cmpf ogt, %50, %51 : vector<8x128xf32>
    %cst_34 = arith.constant 0.00999999977 : f32
    %53 = vector.broadcast %cst_34 : f32 to vector<8x128xf32>
    %54 = arith.mulf %53, %50 : vector<8x128xf32>
    %55 = arith.select %52, %50, %54 : vector<8x128xi1>, vector<8x128xf32>
    %56 = arith.truncf %55 : vector<8x128xf32> to vector<8x128xbf16>
    %c0_35 = arith.constant 0 : index
    %c0_36 = arith.constant 0 : index
    %57 = vector.load %arg12[%c0_35, %c0_36] : memref<128x128xbf16, #tpu.memory_space<vmem>>, vector<128x128xbf16>
    %cst_37 = arith.constant dense<0.000000e+00> : vector<8x128xf32>
    %58 = tpu.matmul %56, %57, %cst_37 {dimension_numbers = #tpu.dot_dimension_numbers<[1], [0], [0], [1], [0, 0, 1, 1], [], []>} : vector<8x128xbf16>, vector<128x128xbf16>, vector<8x128xf32> -> vector<8x128xf32>
    %c0_38 = arith.constant 0 : index
    %c0_39 = arith.constant 0 : index
    %59 = vector.load %arg13[%c0_38, %c0_39] : memref<1x128xf32, #tpu.memory_space<vmem>>, vector<1x128xf32>
    %60 = vector.broadcast %59 : vector<1x128xf32> to vector<8x128xf32>
    %61 = arith.addf %58, %60 : vector<8x128xf32>
    %62 = arith.negf %61 : vector<8x128xf32>
    %63 = math.exp %62 : vector<8x128xf32>
    %cst_40 = arith.constant 1.000000e+00 : f32
    %64 = vector.broadcast %cst_40 : f32 to vector<8x128xf32>
    %65 = arith.addf %64, %63 : vector<8x128xf32>
    %66 = arith.divf %64, %65 : vector<8x128xf32>
    %c0_41 = arith.constant 0 : index
    %c0_42 = arith.constant 0 : index
    %67 = vector.load %arg14[%c0_41, %c0_42] : memref<8x128xf32, #tpu.memory_space<vmem>>, vector<8x128xf32>
    tpu.vector_store %arg14[%c0_41, %c0_42], %66 {strides = array<i32>} : memref<8x128xf32, #tpu.memory_space<vmem>>, vector<8x128xf32>,
    return
  }
  func.func @transform_0(%arg0: i32) -> (i32, i32) {
    %c0_i32 = arith.constant 0 : i32
    %c0_i32_0 = arith.constant 0 : i32
    return %arg0, %c0_i32 : i32, i32
  }
  func.func @transform_1(%arg0: i32) -> (i32, i32) {
    %c0_i32 = arith.constant 0 : i32
    %c0_i32_0 = arith.constant 0 : i32
    %c0_i32_1 = arith.constant 0 : i32
    return %c0_i32, %c0_i32_0 : i32, i32
  }
  func.func @transform_2(%arg0: i32) -> (i32, i32) {
    %c0_i32 = arith.constant 0 : i32
    %c0_i32_0 = arith.constant 0 : i32
    %c0_i32_1 = arith.constant 0 : i32
    return %c0_i32, %c0_i32_0 : i32, i32
  }
  func.func @transform_3(%arg0: i32) -> (i32, i32) {
    %c0_i32 = arith.constant 0 : i32
    %c0_i32_0 = arith.constant 0 : i32
    %c0_i32_1 = arith.constant 0 : i32
    return %c0_i32, %c0_i32_0 : i32, i32
  }
  func.func @transform_4(%arg0: i32) -> (i32, i32) {
    %c0_i32 = arith.constant 0 : i32
    %c0_i32_0 = arith.constant 0 : i32
    %c0_i32_1 = arith.constant 0 : i32
    return %c0_i32, %c0_i32_0 : i32, i32
  }
  func.func @transform_5(%arg0: i32) -> (i32, i32) {
    %c0_i32 = arith.constant 0 : i32
    %c0_i32_0 = arith.constant 0 : i32
    %c0_i32_1 = arith.constant 0 : i32
    return %c0_i32, %c0_i32_0 : i32, i32
  }
  func.func @transform_6(%arg0: i32) -> (i32, i32) {
    %c0_i32 = arith.constant 0 : i32
    %c0_i32_0 = arith.constant 0 : i32
    %c0_i32_1 = arith.constant 0 : i32
    return %c0_i32, %c0_i32_0 : i32, i32
  }
  func.func @transform_7(%arg0: i32) -> (i32, i32) {
    %c0_i32 = arith.constant 0 : i32
    %c0_i32_0 = arith.constant 0 : i32
    %c0_i32_1 = arith.constant 0 : i32
    return %c0_i32, %c0_i32_0 : i32, i32
  }
  func.func @transform_8(%arg0: i32) -> (i32, i32) {
    %c0_i32 = arith.constant 0 : i32
    %c0_i32_0 = arith.constant 0 : i32
    %c0_i32_1 = arith.constant 0 : i32
    return %c0_i32, %c0_i32_0 : i32, i32
  }
  func.func @transform_9(%arg0: i32) -> (i32, i32) {
    %c0_i32 = arith.constant 0 : i32
    %c0_i32_0 = arith.constant 0 : i32
    %c0_i32_1 = arith.constant 0 : i32
    return %c0_i32, %c0_i32_0 : i32, i32
  }
  func.func @transform_10(%arg0: i32) -> (i32, i32) {
    %c0_i32 = arith.constant 0 : i32
    %c0_i32_0 = arith.constant 0 : i32
    %c0_i32_1 = arith.constant 0 : i32
    return %c0_i32, %c0_i32_0 : i32, i32
  }
  func.func @transform_11(%arg0: i32) -> (i32, i32) {
    %c0_i32 = arith.constant 0 : i32
    %c0_i32_0 = arith.constant 0 : i32
    %c0_i32_1 = arith.constant 0 : i32
    return %c0_i32, %c0_i32_0 : i32, i32
  }
  func.func @transform_12(%arg0: i32) -> (i32, i32) {
    %c0_i32 = arith.constant 0 : i32
    %c0_i32_0 = arith.constant 0 : i32
    %c0_i32_1 = arith.constant 0 : i32
    return %c0_i32, %c0_i32_0 : i32, i32
  }
  func.func @transform_13(%arg0: i32) -> (i32, i32) {
    %c0_i32 = arith.constant 0 : i32
    %c0_i32_0 = arith.constant 0 : i32
    return %arg0, %c0_i32 : i32, i32
  }
}

</mosaic_0001>

<bundles_post_ra>
// kernel: tpu_custom_call.1
= control target key start
LH: loop header
LB: loop body
LE: loop exit
PB: predicated region body
PF: predicated region fallthrough
CT: control target
= control target key end

     0   :  { %18 = vsyncpa [#allocation3], 0  ;;  %s1869_s0 = inlined_call_operand.hbm [shape: f32[8,128], index: 0, kind: input, shape index: {}]   ;;  %s1870_s1 = inlined_call_operand.hbm [shape: bf16[128,256], index: 1, kind: input, shape index: {}]   ;;  %s1871_s2 = inlined_call_operand.vmem [shape: f32[1,256], index: 2, kind: input, shape index: {}]   ;;  %s1872_s3 = inlined_call_operand.hbm [shape: bf16[256,256], index: 3, kind: input, shape index: {}]   ;;  %s1873_s4 = inlined_call_operand.vmem [shape: f32[1,256], index: 4, kind: input, shape index: {}]   ;;  %s1874_s5 = inlined_call_operand.hbm [shape: bf16[256,128], index: 5, kind: input, shape index: {}]   ;;  %s1875_s6 = inlined_call_operand.vmem [shape: f32[1,128], index: 6, kind: input, shape index: {}]   ;;  %s1876_s7 = inlined_call_operand.hbm [shape: bf16[128,128], index: 7, kind: input, shape index: {}]   ;;  %s1877_s8 = inlined_call_operand.vmem [shape: f32[1,128], index: 8, kind: input, shape index: {}]   ;;  %s1878_s9 = inlined_call_operand.hbm [shape: bf16[128,128], index: 9, kind: input, shape index: {}]   ;;  %s1879_s10 = inlined_call_operand.vmem [shape: f32[1,128], index: 10, kind: input, shape index: {}]   ;;  %s1880_s11 = inlined_call_operand.hbm [shape: bf16[128,128], index: 11, kind: input, shape index: {}]   ;;  %s1881_s12 = inlined_call_operand.vmem [shape: f32[1,128], index: 12, kind: input, shape index: {}]   ;;  %s1882_s13 = inlined_call_operand.hbm [shape: f32[8,128], index: 13, kind: output, shape index: {}]  }
   0x1   :  { %19 = vsyncpa [#allocation6], 0 }
   0x2   :  { %20 = vsyncpa [#allocation9], 0 }
   0x3   :  { %21 = vsyncpa [#allocation12], 0 }
   0x4   :  { %22 = vsyncpa [#allocation4], 0  ;;  %s1615_s25 = smov [#allocation5]   ;;  %s1429_s29 = scalar_lea.hbm %s1870_s1, 2048 }
   0x5   :  { %s38_s26 = sshll.u32 %s1615_s25, 4  ;;  %p1430_p0 = scmp.ne.s32.totalorder %s1870_s1, %s1429_s29  ;;  %s39_s26 = int_to_ptr.vmem [resolvable:$true] %s38_s26 }
   0x6   :  { %p1433_p1 = scmp.lt.u32.totalorder %s1429_s29, %s1870_s1 }
   0x8   :  { %p1435_p2 = pnand %p1433_p1, %p1430_p0 }
   0xa   :  { %1438 = shalt.err (!%p1435_p2)
}
   0xb   :  { %s1439_s17 = scalar_lea.vmem %s39_s26, 2048  ;;  %p1444_p4 = scmp.lt.s32.totalorder %s39_s26, %s39_s26 }
   0xc   :  { %p1440_p3 = scmp.ne.s32.totalorder %s39_s26, %s1439_s17  ;;  %p1445_p5 = scmp.lt.s32.totalorder %s1439_s17, %s1439_s17 }
   0xe   :  { %p1446_p6 = por %p1445_p5, %p1444_p4 }
  0x10   :  { %p1447_p7 = pnand %p1446_p6, %p1440_p3 }
  0x12   :  { %1450 = shalt.err (!%p1447_p7)
}
  0x13   :  { %s1616_s18 = smov 128   ;;  %s1617_s19 = smov 8  }
  0x14   :  { %44 = dma.hbm_to_vmem [thread:$0]  %s1870_s1, 2048, %s39_s26, [#allocation6], %s1616_s18, %s1616_s18, %s1617_s19  }
  0x15   :  { %s1618_s22 = smov [#allocation8]   ;;  %s1451_s27 = scalar_lea.hbm %s1874_s5, 2048 }
  0x16   :  { %s66_s23 = sshll.u32 %s1618_s22, 4  ;;  %p1452_p8 = scmp.ne.s32.totalorder %s1874_s5, %s1451_s27  ;;  %s67_s23 = int_to_ptr.vmem [resolvable:$true] %s66_s23 }
  0x17   :  { %p1455_p9 = scmp.lt.u32.totalorder %s1451_s27, %s1874_s5 }
  0x19   :  { %p1457_p10 = pnand %p1455_p9, %p1452_p8 }
  0x1b   :  { %1460 = shalt.err (!%p1457_p10)
}
  0x1c   :  { %s1461_s15 = scalar_lea.vmem %s67_s23, 2048  ;;  %p1466_p12 = scmp.lt.s32.totalorder %s67_s23, %s67_s23 }
  0x1d   :  { %p1462_p11 = scmp.ne.s32.totalorder %s67_s23, %s1461_s15  ;;  %p1467_p13 = scmp.lt.s32.totalorder %s1461_s15, %s1461_s15 }
  0x1f   :  { %p1468_p0 = por %p1467_p13, %p1466_p12 }
  0x21   :  { %p1469_p1 = pnand %p1468_p0, %p1462_p11 }
  0x23   :  { %1472 = shalt.err (!%p1469_p1)
}
  0x24   :  { %s1619_s1 = smov 64   ;;  %s1620_s26 = smov 4  }
  0x25   :  { %72 = dma.hbm_to_vmem [thread:$0]  %s1874_s5, 2048, %s67_s23, [#allocation9], %s1619_s1, %s1619_s1, %s1620_s26  }
  0x26   :  { %s1621_s20 = smov [#allocation11]   ;;  %s1622_s22 = smov [#allocation2]  }
  0x27   :  { %s94_s21 = sshll.u32 %s1621_s20, 4  ;;  %s29_s24 = sshll.u32 %s1622_s22, 4  ;;  %s95_s21 = int_to_ptr.vmem [resolvable:$true] %s94_s21  ;;  %s30_s24 = int_to_ptr.vmem [resolvable:$true] %s29_s24 }
  0x28   :  { %s1473_s28 = scalar_lea.hbm %s1878_s9, 1024 }
  0x29   :  { %p1474_p2 = scmp.ne.s32.totalorder %s1878_s9, %s1473_s28  ;;  %p1477_p3 = scmp.lt.u32.totalorder %s1473_s28, %s1878_s9 }
  0x2b   :  { %p1479_p4 = pnand %p1477_p3, %p1474_p2 }
  0x2d   :  { %1482 = shalt.err (!%p1479_p4)
}
  0x2e   :  { %s1483_s5 = scalar_lea.vmem %s95_s21, 1024  ;;  %p1488_p6 = scmp.lt.s32.totalorder %s95_s21, %s95_s21 }
  0x2f   :  { %p1484_p5 = scmp.ne.s32.totalorder %s95_s21, %s1483_s5  ;;  %p1489_p7 = scmp.lt.s32.totalorder %s1483_s5, %s1483_s5 }
  0x31   :  { %p1490_p8 = por %p1489_p7, %p1488_p6 }
  0x33   :  { %p1491_p9 = pnand %p1490_p8, %p1484_p5 }
  0x35   :  { %1494 = shalt.err (!%p1491_p9)
}
  0x36   :  { %100 = dma.hbm_to_vmem [thread:$0]  %s1878_s9, 1024, %s95_s21, [#allocation12], %s1619_s1, %s1619_s1, %s1620_s26  }
  0x37   :  { %s1495_s22 = scalar_lea.hbm %s1869_s0, 128 }
  0x38   :  { %p1496_p10 = scmp.ne.s32.totalorder %s1869_s0, %s1495_s22  ;;  %p1499_p11 = scmp.lt.u32.totalorder %s1495_s22, %s1869_s0 }
  0x3a   :  { %p1501_p12 = pnand %p1499_p11, %p1496_p10 }
  0x3c   :  { %1504 = shalt.err (!%p1501_p12)
}
  0x3d   :  { %s1505_s30 = scalar_lea.vmem %s30_s24, 128  ;;  %p1510_p0 = scmp.lt.s32.totalorder %s30_s24, %s30_s24 }
  0x3e   :  { %p1506_p13 = scmp.ne.s32.totalorder %s30_s24, %s1505_s30  ;;  %p1511_p1 = scmp.lt.s32.totalorder %s1505_s30, %s1505_s30 }
  0x40   :  { %p1512_p2 = por %p1511_p1, %p1510_p0 }
  0x42   :  { %p1513_p3 = pnand %p1512_p2, %p1506_p13 }
  0x44   :  { %1516 = shalt.err (!%p1513_p3)
}
  0x45   :  { %32 = dma.hbm_to_vmem [thread:$0]  %s1869_s0, 128, %s30_s24, [#allocation3]  }
  0x46   :  { %s1623_s14 = smov [#allocation7]   ;;  %s1624_s5 = smov [#allocation10]  }
  0x47   :  { %s52_s15 = sshll.u32 %s1623_s14, 4  ;;  %s80_s23 = sshll.u32 %s1624_s5, 4  ;;  %s53_s15 = int_to_ptr.vmem [resolvable:$true] %s52_s15  ;;  %s1757_s23 = int_to_ptr.vmem [resolvable:$true] %s80_s23 }
  0x48   :  { %s1517_s20 = scalar_lea.hbm %s1872_s3, 4096 }
  0x49   :  { %p1518_p4 = scmp.ne.s32.totalorder %s1872_s3, %s1517_s20  ;;  %p1521_p5 = scmp.lt.u32.totalorder %s1517_s20, %s1872_s3 }
  0x4b   :  { %p1523_p6 = pnand %p1521_p5, %p1518_p4 }
  0x4d   :  { %1526 = shalt.err (!%p1523_p6)
}
  0x4e   :  { %s1527_s0 = scalar_lea.vmem %s53_s15, 4096  ;;  %p1532_p8 = scmp.lt.s32.totalorder %s53_s15, %s53_s15 }
  0x4f   :  { %p1528_p7 = scmp.ne.s32.totalorder %s53_s15, %s1527_s0  ;;  %p1533_p9 = scmp.lt.s32.totalorder %s1527_s0, %s1527_s0 }
  0x51   :  { %p1534_p10 = por %p1533_p9, %p1532_p8 }
  0x53   :  { %p1535_p11 = pnand %p1534_p10, %p1528_p7 }
  0x55   :  { %1538 = shalt.err (!%p1535_p11)
}
  0x56   :  { %58 = dma.hbm_to_vmem [thread:$0]  %s1872_s3, 4096, %s53_s15, [#allocation6], %s1616_s18, %s1616_s18, %s1617_s19  }
  0x57   :  { %s1539_s21 = scalar_lea.hbm %s1876_s7, 1024 }
  0x58   :  { %p1540_p12 = scmp.ne.s32.totalorder %s1876_s7, %s1539_s21  ;;  %p1543_p13 = scmp.lt.u32.totalorder %s1539_s21, %s1876_s7 }
  0x5a   :  { %p1545_p0 = pnand %p1543_p13, %p1540_p12 }
  0x5c   :  { %1548 = shalt.err (!%p1545_p0)
}
  0x5d   :  { %s1549_s20 = scalar_lea.vmem %s1757_s23, 1024  ;;  %p1554_p2 = scmp.lt.s32.totalorder %s1757_s23, %s1757_s23 }
  0x5e   :  { %p1550_p1 = scmp.ne.s32.totalorder %s1757_s23, %s1549_s20  ;;  %p1555_p3 = scmp.lt.s32.totalorder %s1549_s20, %s1549_s20 }
  0x60   :  { %p1556_p4 = por %p1555_p3, %p1554_p2 }
  0x62   :  { %p1557_p5 = pnand %p1556_p4, %p1550_p1 }
  0x64   :  { %1560 = shalt.err (!%p1557_p5)
}
  0x65   :  { %86 = dma.hbm_to_vmem [thread:$0]  %s1876_s7, 1024, %s1757_s23, [#allocation9], %s1619_s1, %s1619_s1, %s1620_s26  }
  0x66   :  { %s1625_s19 = smov [#allocation13]   ;;  %s1561_s27 = scalar_lea.hbm %s1880_s11, 1024 }
  0x67   :  { %s108_s15 = sshll.u32 %s1625_s19, 4  ;;  %p1562_p6 = scmp.ne.s32.totalorder %s1880_s11, %s1561_s27  ;;  %s109_s15 = int_to_ptr.vmem [resolvable:$true] %s108_s15 }
  0x68   :  { %p1565_p7 = scmp.lt.u32.totalorder %s1561_s27, %s1880_s11 }
  0x6a   :  { %p1567_p8 = pnand %p1565_p7, %p1562_p6 }
  0x6c   :  { %1570 = shalt.err (!%p1567_p8)
}
  0x6d   :  { %s1571_s30 = scalar_lea.vmem %s109_s15, 1024  ;;  %p1576_p10 = scmp.lt.s32.totalorder %s109_s15, %s109_s15 }
  0x6e   :  { %p1572_p9 = scmp.ne.s32.totalorder %s109_s15, %s1571_s30  ;;  %p1577_p11 = scmp.lt.s32.totalorder %s1571_s30, %s1571_s30 }
  0x70   :  { %p1578_p12 = por %p1577_p11, %p1576_p10 }
  0x72   :  { %p1579_p13 = pnand %p1578_p12, %p1572_p9 }
  0x74   :  { %1582 = shalt.err (!%p1579_p13)
}
  0x75   :  { %114 = dma.hbm_to_vmem [thread:$0]  %s1880_s11, 1024, %s109_s15, [#allocation12], %s1619_s1, %s1619_s1, %s1620_s26  }
  0x76   :  { %1605 = dma.done.wait [#allocation3], 128  }
  0x77   :  { %1606 = vsyncadd [#allocation3], 4294967168 }
  0x78   :  { %1607 = dma.done.wait [#allocation6], 6144  }
  0x79   :  { %1608 = vsyncadd [#allocation6], 4294961152 }
  0x7a   :  { %1609 = dma.done.wait [#allocation9], 3072  }
  0x7b   :  { %1610 = vsyncadd [#allocation9], 4294964224 }
  0x7c   :  { %1611 = dma.done.wait [#allocation12], 2048  }
  0x7d   :  { %1612 = vsyncadd [#allocation12], 4294965248  ;;  %v1626_v0 = vmov 0   ;;  %v1313_v1 = vld [vmem:[#allocation5 + $0x4] ss:$8 sps:$4 sm:$0xff]   ;;  %v139_v26 = vld [vmem:[#allocation2] sm:$0xff]  ;;  %v159_v63 = vlaneseq }
  0x7e   :  { %281 = vmatprep.mubr.bf16.mxu0 %v1626_v0  ;;  %v1315_v2 = vld [vmem:[#allocation5] ss:$8 sps:$4 sm:$0xff]   ;;  %249 = vmatprep.subr.bf16.mxu0 %v1313_v1  ;;  %v1316_v3 = vld [vmem:[#allocation5 + $0x14] ss:$8 sps:$4 sm:$0xff]   ;;  %v1318_v4 = vld [vmem:[#allocation5 + $0x10] ss:$8 sps:$4 sm:$0xff]   ;;  %v140_v31 = vpack.c.bf16 %v139_v26, %v139_v26 }
  0x7f   :  { %250 = vmatpush1.bf16.msra.mxu0 %v1315_v2  ;;  %v1319_v5 = vld [vmem:[#allocation5 + $0x24] ss:$8 sps:$4 sm:$0xff]   ;;  %v1321_v6 = vld [vmem:[#allocation5 + $0x20] ss:$8 sps:$4 sm:$0xff]   ;;  %v1322_v7 = vld [vmem:[#allocation5 + $0x34] ss:$8 sps:$4 sm:$0xff]  }
  0x80   :  { %251 = vmatprep.subr.bf16.mxu0 %v1316_v3  ;;  %v1324_v8 = vld [vmem:[#allocation5 + $0x30] ss:$8 sps:$4 sm:$0xff]   ;;  %v1325_v9 = vld [vmem:[#allocation5 + $0x44] ss:$8 sps:$4 sm:$0xff]   ;;  %v1339_v11 = vld [vmem:[#allocation7] ss:$8 sps:$4 sm:$0xff]  }
  0x81   :  { %v1337_v10 = vld [vmem:[#allocation7 + $0x4] ss:$8 sps:$4 sm:$0xff]   ;;  %v1340_v12 = vld [vmem:[#allocation7 + $0x14] ss:$8 sps:$4 sm:$0xff]   ;;  %v1327_v13 = vld [vmem:[#allocation5 + $0x40] ss:$8 sps:$4 sm:$0xff]  }
  0x82   :  { %502 = vmatprep.subr.bf16.mxu1 %v1337_v10  ;;  %v1342_v14 = vld [vmem:[#allocation7 + $0x10] ss:$8 sps:$4 sm:$0xff]   ;;  %v1343_v15 = vld [vmem:[#allocation7 + $0x24] ss:$8 sps:$4 sm:$0xff]   ;;  %v1328_v16 = vld [vmem:[#allocation5 + $0x54] ss:$8 sps:$4 sm:$0xff]  }
  0x83   :  { %252 = vmatpush1.bf16.msra.mxu0 %v1318_v4  ;;  %503 = vmatpush1.bf16.msra.mxu1 %v1339_v11  ;;  %v1330_v17 = vld [vmem:[#allocation5 + $0x50] ss:$8 sps:$4 sm:$0xff]   ;;  %v1345_v18 = vld [vmem:[#allocation7 + $0x20] ss:$8 sps:$4 sm:$0xff]   ;;  %v1346_v19 = vld [vmem:[#allocation7 + $0x34] ss:$8 sps:$4 sm:$0xff]  }
  0x84   :  { %253 = vmatprep.subr.bf16.mxu0 %v1319_v5  ;;  %504 = vmatprep.subr.bf16.mxu1 %v1340_v12  ;;  %v1331_v20 = vld [vmem:[#allocation5 + $0x64] ss:$8 sps:$4 sm:$0xff]   ;;  %v1333_v21 = vld [vmem:[#allocation5 + $0x60] ss:$8 sps:$4 sm:$0xff]   ;;  %v1348_v22 = vld [vmem:[#allocation7 + $0x30] ss:$8 sps:$4 sm:$0xff]  }
  0x85   :  { %v1349_v23 = vld [vmem:[#allocation7 + $0x44] ss:$8 sps:$4 sm:$0xff]   ;;  %v1334_v24 = vld [vmem:[#allocation5 + $0x74] ss:$8 sps:$4 sm:$0xff]   ;;  %v1336_v25 = vld [vmem:[#allocation5 + $0x70] ss:$8 sps:$4 sm:$0xff]  }
  0x86   :  { %v1351_v27 = vld [vmem:[#allocation7 + $0x40] ss:$8 sps:$4 sm:$0xff]   ;;  %v1352_v28 = vld [vmem:[#allocation7 + $0x54] ss:$8 sps:$4 sm:$0xff]   ;;  %v1354_v29 = vld [vmem:[#allocation7 + $0x50] ss:$8 sps:$4 sm:$0xff]  }
  0x87   :  { %254 = vmatpush1.bf16.msra.mxu0 %v1321_v6  ;;  %505 = vmatpush1.bf16.msra.mxu1 %v1342_v14  ;;  %v1355_v30 = vld [vmem:[#allocation7 + $0x64] ss:$8 sps:$4 sm:$0xff]   ;;  %v1357_v32 = vld [vmem:[#allocation7 + $0x60] ss:$8 sps:$4 sm:$0xff]   ;;  %v1358_v33 = vld [vmem:[#allocation7 + $0x74] ss:$8 sps:$4 sm:$0xff]  }
  0x88   :  { %255 = vmatprep.subr.bf16.mxu0 %v1322_v7  ;;  %506 = vmatprep.subr.bf16.mxu1 %v1343_v15  ;;  %v1360_v34 = vld [vmem:[#allocation7 + $0x70] ss:$8 sps:$4 sm:$0xff]   ;;  %v1361_v35 = vld [vmem:[#allocation7 + $0x84] ss:$8 sps:$4 sm:$0xff]   ;;  %v1363_v36 = vld [vmem:[#allocation7 + $0x80] ss:$8 sps:$4 sm:$0xff]  }
  0x89   :  { %v1364_v37 = vld [vmem:[#allocation7 + $0x94] ss:$8 sps:$4 sm:$0xff]   ;;  %v1366_v38 = vld [vmem:[#allocation7 + $0x90] ss:$8 sps:$4 sm:$0xff]   ;;  %v1367_v39 = vld [vmem:[#allocation7 + $0xa4] ss:$8 sps:$4 sm:$0xff]  }
  0x8a   :  { %v1369_v40 = vld [vmem:[#allocation7 + $0xa0] ss:$8 sps:$4 sm:$0xff]   ;;  %v1370_v41 = vld [vmem:[#allocation7 + $0xb4] ss:$8 sps:$4 sm:$0xff]   ;;  %v1372_v42 = vld [vmem:[#allocation7 + $0xb0] ss:$8 sps:$4 sm:$0xff]  }
  0x8b   :  { %256 = vmatpush1.bf16.msra.mxu0 %v1324_v8  ;;  %507 = vmatpush1.bf16.msra.mxu1 %v1345_v18  ;;  %v1373_v43 = vld [vmem:[#allocation7 + $0xc4] ss:$8 sps:$4 sm:$0xff]   ;;  %v1375_v44 = vld [vmem:[#allocation7 + $0xc0] ss:$8 sps:$4 sm:$0xff]   ;;  %v1376_v45 = vld [vmem:[#allocation7 + $0xd4] ss:$8 sps:$4 sm:$0xff]  }
  0x8c   :  { %257 = vmatprep.subr.bf16.mxu0 %v1325_v9  ;;  %508 = vmatprep.subr.bf16.mxu1 %v1346_v19  ;;  %v1378_v46 = vld [vmem:[#allocation7 + $0xd0] ss:$8 sps:$4 sm:$0xff]   ;;  %v1379_v47 = vld [vmem:[#allocation7 + $0xe4] ss:$8 sps:$4 sm:$0xff]   ;;  %v1381_v48 = vld [vmem:[#allocation7 + $0xe0] ss:$8 sps:$4 sm:$0xff]  }
  0x8d   :  { %v1382_v49 = vld [vmem:[#allocation7 + $0xf4] ss:$8 sps:$4 sm:$0xff]   ;;  %v1384_v50 = vld [vmem:[#allocation7 + $0xf0] ss:$8 sps:$4 sm:$0xff]   ;;  %v1385_v51 = vld [vmem:[#allocation8 + $0x40] sm:$0xff]   ;;  %v160_v0 = vshrl.u32 %v159_v63, 7 }
  0x8e   :  { %v1386_v52 = vld [vmem:[#allocation8] sm:$0xff]   ;;  %v1387_v53 = vld [vmem:[#allocation8 + $0x48] sm:$0xff]   ;;  %v1389_v55 = vld [vmem:[#allocation8 + $0x50] sm:$0xff]   ;;  %vm1628_vm4 = vmmov 0  }
  0x8f   :  { %258 = vmatpush1.bf16.msra.mxu0 %v1327_v13  ;;  %509 = vmatpush1.bf16.msra.mxu1 %v1348_v22  ;;  %v1388_v54 = vld [vmem:[#allocation8 + $0x8] sm:$0xff]   ;;  %v1390_v56 = vld [vmem:[#allocation8 + $0x10] sm:$0xff]   ;;  %v1391_v57 = vld [vmem:[#allocation8 + $0x58] sm:$0xff]   ;;  %v161_v1 = vsub.s32 0, %v160_v0  ;;  %v165_v3 = vsub.s32 1, %v160_v0  ;;  %v1627_v22 = vmov 0.0  }
  0x90   :  { %259 = vmatprep.subr.bf16.mxu0 %v1328_v16  ;;  %510 = vmatprep.subr.bf16.mxu1 %v1349_v23  ;;  %v1392_v58 = vld [vmem:[#allocation8 + $0x18] sm:$0xff]   ;;  %v1393_v59 = vld [vmem:[#allocation8 + $0x60] sm:$0xff]   ;;  %v1395_v61 = vld [vmem:[#allocation8 + $0x68] sm:$0xff]  }
  0x91   :  { %v1394_v60 = vld [vmem:[#allocation8 + $0x20] sm:$0xff]   ;;  %v1396_v62 = vld [vmem:[#allocation8 + $0x28] sm:$0xff]   ;;  %v157_v2 = vld [vmem:[%s1871_s2] sm:$0x3] }
  0x92   :  { %v162_v4 = vrot.slane %v157_v2, %v161_v1  ;;  %v166_v5 = vrot.slane %v157_v2, %v165_v3  ;;  %v1397_v18 = vld [vmem:[#allocation8 + $0x70] sm:$0xff]   ;;  %v330_v23 = vld [vmem:[%s1873_s4] sm:$0x3]  ;;  %v1417_v0 = vld [vmem:[#allocation13] sm:$0xff]  }
  0x93   :  { %260 = vmatpush1.bf16.msra.mxu0 %v1330_v17  ;;  %511 = vmatpush1.bf16.msra.mxu1 %v1351_v27  ;;  %v1398_v19 = vld [vmem:[#allocation8 + $0x30] sm:$0xff]   ;;  %v1416_v63 = vld [vmem:[#allocation11 + $0x38] sm:$0xff]  }
  0x94   :  { %261 = vmatprep.subr.bf16.mxu0 %v1331_v20  ;;  %512 = vmatprep.subr.bf16.mxu1 %v1352_v28  ;;  %v1399_v20 = vld [vmem:[#allocation8 + $0x78] sm:$0xff]   ;;  %v1419_v2 = vld [vmem:[#allocation13 + $0x10] sm:$0xff]  }
  0x97   :  { %262 = vmatpush1.bf16.msra.mxu0 %v1333_v21  ;;  %513 = vmatpush1.bf16.msra.mxu1 %v1354_v29  ;;  %v1400_v21 = vld [vmem:[#allocation8 + $0x38] sm:$0xff]  }
  0x98   :  { %263 = vmatprep.subr.bf16.mxu0 %v1334_v24  ;;  %514 = vmatprep.subr.bf16.mxu1 %v1355_v30  ;;  %v335_v24 = vrot.slane %v330_v23, %v161_v1  ;;  %v1418_v1 = vld [vmem:[#allocation13 + $0x8] sm:$0xff]  }
  0x9b   :  { %264 = vmatpush1.bf16.msra.mxu0 %v1336_v25  ;;  %515 = vmatpush1.bf16.msra.mxu1 %v1357_v32  ;;  %v339_v25 = vrot.slane %v330_v23, %v165_v3  ;;  %v1420_v3 = vld [vmem:[#allocation13 + $0x18] sm:$0xff]  }
  0x9c   :  { %516 = vmatprep.subr.bf16.mxu1 %v1358_v33  ;;  %1189 = vmatprep.subr.bf16.mxu0 %v1385_v51  ;;  %v1414_v51 = vld [vmem:[#allocation11 + $0x28] sm:$0xff]  }
  0x9e   :  { %282 = vmatmul.mubr.bf16.vlgmr.msra.gmra.mrb[0].mxu0 %v140_v31 }
  0x9f   :  { %517 = vmatpush1.bf16.msra.mxu1 %v1360_v34  ;;  %1190 = vmatpush3.bf16.msra.mxu0 %v1386_v52 }
  0xa0   :  { %518 = vmatprep.subr.bf16.mxu1 %v1361_v35  ;;  %1191 = vmatprep.subr.bf16.mxu0 %v1387_v53  ;;  %v1144_v53 = vld [vmem:[%s1875_s6] ss:$0 sm:$0xff] }
  0xa3   :  { %519 = vmatpush1.bf16.msra.mxu1 %v1363_v36  ;;  %1192 = vmatpush3.bf16.msra.mxu0 %v1388_v54 }
  0xa4   :  { %520 = vmatprep.subr.bf16.mxu1 %v1364_v37  ;;  %1193 = vmatprep.subr.bf16.mxu0 %v1389_v55  ;;  %v1401_v37 = vld [vmem:[#allocation10] sm:$0xff]  }
  0xa7   :  { %521 = vmatpush1.bf16.msra.mxu1 %v1366_v38  ;;  %1194 = vmatpush3.bf16.msra.mxu0 %v1390_v56 }
  0xa8   :  { %522 = vmatprep.subr.bf16.mxu1 %v1367_v39  ;;  %1195 = vmatprep.subr.bf16.mxu0 %v1391_v57  ;;  %v1402_v39 = vld [vmem:[#allocation10 + $0x8] sm:$0xff]  }
  0xab   :  { %523 = vmatpush1.bf16.msra.mxu1 %v1369_v40  ;;  %1196 = vmatpush3.bf16.msra.mxu0 %v1392_v58  ;;  %v1403_v40 = vld [vmem:[#allocation10 + $0x10] sm:$0xff]  }
  0xac   :  { %524 = vmatprep.subr.bf16.mxu1 %v1370_v41  ;;  %1197 = vmatprep.subr.bf16.mxu0 %v1393_v59  ;;  %v1404_v41 = vld [vmem:[#allocation10 + $0x18] sm:$0xff]  }
  0xaf   :  { %525 = vmatpush1.bf16.msra.mxu1 %v1372_v42  ;;  %1198 = vmatpush3.bf16.msra.mxu0 %v1394_v60  ;;  %v1405_v42 = vld [vmem:[#allocation10 + $0x20] sm:$0xff]  }
  0xb0   :  { %526 = vmatprep.subr.bf16.mxu1 %v1373_v43  ;;  %1199 = vmatprep.subr.bf16.mxu0 %v1395_v61  ;;  %v1406_v43 = vld [vmem:[#allocation10 + $0x28] sm:$0xff]  }
  0xb3   :  { %527 = vmatpush1.bf16.msra.mxu1 %v1375_v44  ;;  %1200 = vmatpush3.bf16.msra.mxu0 %v1396_v62  ;;  %v1407_v44 = vld [vmem:[#allocation10 + $0x30] sm:$0xff]  }
  0xb4   :  { %528 = vmatprep.subr.bf16.mxu1 %v1376_v45  ;;  %1201 = vmatprep.subr.bf16.mxu0 %v1397_v18  ;;  %v1408_v45 = vld [vmem:[#allocation10 + $0x38] sm:$0xff]   ;;  %v1415_v62 = vld [vmem:[#allocation11 + $0x30] sm:$0xff]  }
  0xb7   :  { %529 = vmatpush1.bf16.msra.mxu1 %v1378_v46  ;;  %1202 = vmatpush3.bf16.msra.mxu0 %v1398_v19  ;;  %v1409_v46 = vld [vmem:[#allocation11] sm:$0xff]  }
  0xb8   :  { %530 = vmatprep.subr.bf16.mxu1 %v1379_v47  ;;  %1203 = vmatprep.subr.bf16.mxu0 %v1399_v20  ;;  %v1410_v47 = vld [vmem:[#allocation11 + $0x8] sm:$0xff]  }
  0xbb   :  { %531 = vmatpush1.bf16.msra.mxu1 %v1381_v48  ;;  %1204 = vmatpush3.bf16.msra.mxu0 %v1400_v21  ;;  %v1411_v48 = vld [vmem:[#allocation11 + $0x10] sm:$0xff]  }
  0xbc   :  { %532 = vmatprep.subr.bf16.mxu1 %v1382_v49  ;;  %1238 = vmatprep.subr.bf16.mxu0 %v1627_v22  ;;  %v1412_v49 = vld [vmem:[#allocation11 + $0x18] sm:$0xff]  }
  0xbf   :  { %533 = vmatpush1.bf16.msra.mxu1 %v1384_v50  ;;  %v1413_v50 = vld [vmem:[#allocation11 + $0x20] sm:$0xff]  }
  0xc0   :  { %1258 = vmatprep.subr.bf16.mxu1 %v1627_v22 }
 0x171   :  { %v283_v6 = vpop.f32.mrb[0].mxu0 }
 0x172   :  { %v284_v7 = vadd.f32 %v283_v6, %v162_v4  ;;  %v285_v8 = vpop.f32.mrb[1].mxu0  ;;  %v1421_v4 = vld [vmem:[#allocation13 + $0x20] sm:$0xff]   ;;  %v1161_v6 = vld [vmem:[%s1877_s8] ss:$0 sm:$0xff] }
 0x173   :  { %v286_v9 = vadd.f32 %v285_v8, %v166_v5  ;;  %v287_v10 = vpop.f32.mrb[2].mxu0  ;;  %v1422_v5 = vld [vmem:[#allocation13 + $0x28] sm:$0xff]  }
 0x174   :  { %vm290_vm0 = vcmp.gt.f32.partialorder %v284_v7, 0.0  ;;  %v292_v11 = vmul.f32 0.01, %v284_v7  ;;  %v288_v12 = vpop.f32.mrb[3].mxu0 }
 0x175   :  { %vm291_vm1 = vcmp.gt.f32.partialorder %v286_v9, 0.0  ;;  %v293_v13 = vmul.f32 0.01, %v286_v9 }
 0x176   :  { %v294_v14 = vsel %vm290_vm0, %v284_v7, %v292_v11 }
 0x177   :  { %v295_v15 = vsel %vm291_vm1, %v286_v9, %v293_v13  ;;  %v296_v17 = vpack.c.bf16 %v294_v14, %v294_v14 }
 0x178   :  { %v297_v16 = vpack.c.bf16 %v295_v15, %v295_v15  ;;  %v1423_v15 = vld [vmem:[#allocation13 + $0x30] sm:$0xff]  }
 0x17a   :  { %534 = vmatprep.mubr.bf16.mxu1 %v297_v16  ;;  %v1424_v16 = vld [vmem:[#allocation13 + $0x38] sm:$0xff]  }
 0x17b   :  { %535 = vmatmul.mubr.bf16.vlgmr.msra.gmra.mrb[0].mxu1 %v296_v17  ;;  %v1170_v17 = vld [vmem:[%s1879_s10] ss:$0 sm:$0xff]  ;;  %s1629_s10 = smov [#allocation14]  }
 0x17c   :  { %1274 = vmatprep.mubr.msk.bf16.mxu1 %vm1628_vm4, %v1627_v22  ;;  %1259 = vmatpush3.bf16.msra.mxu1 %v1409_v46  ;;  %s1084_s17 = sshll.u32 %s1629_s10, 4  ;;  %s1085_s17 = int_to_ptr.vmem [resolvable:$true] %s1084_s17 }
 0x17d   :  { %1260 = vmatprep.subr.bf16.mxu1 %v1627_v22  ;;  %s1583_s20 = scalar_lea.vmem %s1085_s17, 128  ;;  %p1588_p1 = scmp.lt.s32.totalorder %s1085_s17, %s1085_s17 }
 0x17e   :  { %p1584_p0 = scmp.ne.s32.totalorder %s1085_s17, %s1583_s20  ;;  %p1589_p2 = scmp.lt.s32.totalorder %s1583_s20, %s1583_s20 }
 0x180   :  { %1261 = vmatpush3.bf16.msra.mxu1 %v1410_v47  ;;  %p1590_p3 = por %p1589_p2, %p1588_p1 }
 0x181   :  { %1262 = vmatprep.subr.bf16.mxu1 %v1627_v22 }
 0x182   :  { %p1591_p4 = pnand %p1590_p3, %p1584_p0 }
 0x184   :  { %1263 = vmatpush3.bf16.msra.mxu1 %v1411_v48 }
 0x185   :  { %1264 = vmatprep.subr.bf16.mxu1 %v1627_v22 }
 0x188   :  { %1265 = vmatpush3.bf16.msra.mxu1 %v1412_v49 }
 0x189   :  { %1266 = vmatprep.subr.bf16.mxu1 %v1627_v22 }
 0x18c   :  { %1267 = vmatpush3.bf16.msra.mxu1 %v1413_v50 }
 0x18d   :  { %1268 = vmatprep.subr.bf16.mxu1 %v1627_v22 }
 0x190   :  { %1269 = vmatpush3.bf16.msra.mxu1 %v1414_v51 }
 0x191   :  { %1270 = vmatprep.subr.bf16.mxu1 %v1627_v22 }
 0x194   :  { %1271 = vmatpush3.bf16.msra.mxu1 %v1415_v62 }
 0x195   :  { %1272 = vmatprep.subr.bf16.mxu1 %v1627_v22 }
 0x198   :  { %1273 = vmatpush3.bf16.msra.mxu1 %v1416_v63 }
 0x24e   :  { %v536_v26 = vpop.f32.mrb[0].mxu1 }
 0x24f   :  { %v537_v27 = vadd.f32 %v536_v26, %v335_v24  ;;  %v538_v28 = vpop.f32.mrb[1].mxu1 }
 0x250   :  { %v539_v29 = vadd.f32 %v538_v28, %v339_v25  ;;  %v540_v30 = vpop.f32.mrb[2].mxu1 }
 0x251   :  { %vm543_vm2 = vcmp.gt.f32.partialorder %v537_v27, 0.0  ;;  %v545_v31 = vmul.f32 0.01, %v537_v27  ;;  %v541_v32 = vpop.f32.mrb[3].mxu1 }
 0x252   :  { %vm544_vm3 = vcmp.gt.f32.partialorder %v539_v29, 0.0  ;;  %v546_v33 = vmul.f32 0.01, %v539_v29 }
 0x253   :  { %v547_v34 = vsel %vm543_vm2, %v537_v27, %v545_v31 }
 0x254   :  { %v548_v35 = vsel %vm544_vm3, %v539_v29, %v546_v33  ;;  %v549_v38 = vpack.c.bf16 %v547_v34, %v547_v34 }
 0x255   :  { %v550_v36 = vpack.c.bf16 %v548_v35, %v548_v35 }
 0x257   :  { %718 = vmatprep.mubr.bf16.mxu0 %v550_v36 }
 0x258   :  { %719 = vmatmul.mubr.bf16.vlgmr.msra.gmra.mrb[4].mxu0 %v549_v38 }
 0x259   :  { %1239 = vmatpush3.bf16.msra.mxu0 %v1401_v37  ;;  %1254 = vmatprep.mubr.msk.bf16.mxu0 %vm1628_vm4, %v1627_v22 }
 0x25a   :  { %1240 = vmatprep.subr.bf16.mxu0 %v1627_v22 }
 0x25d   :  { %1241 = vmatpush3.bf16.msra.mxu0 %v1402_v39 }
 0x25e   :  { %1242 = vmatprep.subr.bf16.mxu0 %v1627_v22 }
 0x261   :  { %1243 = vmatpush3.bf16.msra.mxu0 %v1403_v40 }
 0x262   :  { %1244 = vmatprep.subr.bf16.mxu0 %v1627_v22 }
 0x265   :  { %1245 = vmatpush3.bf16.msra.mxu0 %v1404_v41 }
 0x266   :  { %1246 = vmatprep.subr.bf16.mxu0 %v1627_v22 }
 0x269   :  { %1247 = vmatpush3.bf16.msra.mxu0 %v1405_v42 }
 0x26a   :  { %1248 = vmatprep.subr.bf16.mxu0 %v1627_v22 }
 0x26d   :  { %1249 = vmatpush3.bf16.msra.mxu0 %v1406_v43 }
 0x26e   :  { %1250 = vmatprep.subr.bf16.mxu0 %v1627_v22 }
 0x271   :  { %1251 = vmatpush3.bf16.msra.mxu0 %v1407_v44 }
 0x272   :  { %1252 = vmatprep.subr.bf16.mxu0 %v1627_v22 }
 0x275   :  { %1253 = vmatpush3.bf16.msra.mxu0 %v1408_v45 }
 0x276   :  { %1278 = vmatprep.subr.bf16.mxu0 %v1627_v22 }
 0x32b   :  { %v1205_v52 = vpop.f32.mrb[4].mxu0 }
 0x32c   :  { %v1206_v54 = vpop.f32.mrb[5].mxu0 }
 0x32d   :  { %v1207_v55 = vadd.f32 %v1206_v54, %v1205_v52  ;;  %v1208_v56 = vpop.f32.mrb[6].mxu0 }
 0x32e   :  { %v1209_v57 = vpop.f32.mrb[7].mxu0 }
 0x32f   :  { %v721_v58 = vadd.f32 %v1207_v55, %v1144_v53 }
 0x331   :  { %vm726_vm5 = vcmp.gt.f32.partialorder %v721_v58, 0.0  ;;  %v727_v59 = vmul.f32 0.01, %v721_v58 }
 0x333   :  { %v728_v60 = vsel %vm726_vm5, %v721_v58, %v727_v59 }
 0x334   :  { %v729_v61 = vpack.c.bf16 %v728_v60, %v728_v60 }
 0x336   :  { %1255 = vmatmul.mubr.bf16.vlgmr.msra.gmra.mrb[8].mxu0 %v729_v61 }
 0x337   :  { %1294 = vmatprep.mubr.msk.bf16.mxu0 %vm1628_vm4, %v1627_v22  ;;  %1279 = vmatpush3.bf16.msra.mxu0 %v1417_v0 }
 0x338   :  { %1280 = vmatprep.subr.bf16.mxu0 %v1627_v22 }
 0x33b   :  { %1281 = vmatpush3.bf16.msra.mxu0 %v1418_v1 }
 0x33c   :  { %1282 = vmatprep.subr.bf16.mxu0 %v1627_v22 }
 0x33f   :  { %1283 = vmatpush3.bf16.msra.mxu0 %v1419_v2 }
 0x340   :  { %1284 = vmatprep.subr.bf16.mxu0 %v1627_v22 }
 0x343   :  { %1285 = vmatpush3.bf16.msra.mxu0 %v1420_v3 }
 0x344   :  { %1286 = vmatprep.subr.bf16.mxu0 %v1627_v22 }
 0x347   :  { %1287 = vmatpush3.bf16.msra.mxu0 %v1421_v4 }
 0x348   :  { %1288 = vmatprep.subr.bf16.mxu0 %v1627_v22 }
 0x34b   :  { %1289 = vmatpush3.bf16.msra.mxu0 %v1422_v5 }
 0x34c   :  { %1290 = vmatprep.subr.bf16.mxu0 %v1627_v22 }
 0x34f   :  { %1291 = vmatpush3.bf16.msra.mxu0 %v1423_v15 }
 0x350   :  { %1292 = vmatprep.subr.bf16.mxu0 %v1627_v22  ;;  %v1179_v22 = vld [vmem:[%s1881_s12] ss:$0 sm:$0xff] }
 0x353   :  { %1293 = vmatpush3.bf16.msra.mxu0 %v1424_v16 }
 0x409   :  { %v835_v7 = vpop.f32.mrb[8].mxu0 }
 0x40a   :  { %v836_v8 = vadd.f32 %v1161_v6, %v835_v7  ;;  %v1256_v9 = vpop.f32.mrb[9].mxu0 }
 0x40b   :  { %v838_v10 = vpop.f32.mrb[10].mxu0 }
 0x40c   :  { %vm841_vm6 = vcmp.gt.f32.partialorder %v836_v8, 0.0  ;;  %v842_v11 = vmul.f32 0.01, %v836_v8  ;;  %v1257_v12 = vpop.f32.mrb[11].mxu0 }
 0x40e   :  { %v843_v13 = vsel %vm841_vm6, %v836_v8, %v842_v11 }
 0x40f   :  { %v844_v14 = vpack.c.bf16 %v843_v13, %v843_v13 }
 0x411   :  { %1275 = vmatmul.mubr.bf16.vlgmr.msra.gmra.mrb[4].mxu1 %v844_v14 }
 0x4e4   :  { %v950_v18 = vpop.f32.mrb[4].mxu1 }
 0x4e5   :  { %v951_v19 = vadd.f32 %v1170_v17, %v950_v18  ;;  %v1276_v20 = vpop.f32.mrb[5].mxu1 }
 0x4e6   :  { %v953_v21 = vpop.f32.mrb[6].mxu1 }
 0x4e7   :  { %vm956_vm7 = vcmp.gt.f32.partialorder %v951_v19, 0.0  ;;  %v957_v23 = vmul.f32 0.01, %v951_v19  ;;  %v1277_v24 = vpop.f32.mrb[7].mxu1 }
 0x4e9   :  { %v958_v25 = vsel %vm956_vm7, %v951_v19, %v957_v23 }
 0x4ea   :  { %v959_v26 = vpack.c.bf16 %v958_v25, %v958_v25 }
 0x4ec   :  { %1295 = vmatmul.mubr.bf16.vlgmr.msra.gmra.mrb[12].mxu0 %v959_v26 }
 0x5bf   :  { %v1065_v27 = vpop.f32.mrb[12].mxu0 }
 0x5c0   :  { %v1066_v28 = vadd.f32 %v1179_v22, %v1065_v27  ;;  %v1296_v29 = vpop.f32.mrb[13].mxu0 }
 0x5c1   :  { %v1068_v30 = vpop.f32.mrb[14].mxu0 }
 0x5c2   :  { %v1188_v31 = vmul.f32 -1.442695, %v1066_v28  ;;  %v1297_v32 = vpop.f32.mrb[15].mxu0 }
 0x5c4   :  { %1425 = vpow2.f32 %v1188_v31 }
 0x5ce   :  { %v1426_v33 = vpop.eup %1425 }
 0x5cf   :  { %v1074_v34 = vadd.f32 1.0, %v1426_v33 }
 0x5d1   :  { %1427 = vrcp.f32 %v1074_v34 }
 0x5db   :  { %v1428_v35 = vpop.eup %1427 }
 0x5dc   :  { %1077 = vst [vmem:[#allocation14] sm:$0xff] %v1428_v35 }
 0x5dd   :  { %1594 = shalt.err (!%p1591_p4)
}
 0x5de   :  { %s1595_s18 = scalar_lea.hbm %s1882_s13, 128 }
 0x5df   :  { %p1596_p5 = scmp.ne.s32.totalorder %s1882_s13, %s1595_s18  ;;  %p1599_p6 = scmp.lt.u32.totalorder %s1595_s18, %s1882_s13 }
 0x5e1   :  { %p1601_p7 = pnand %p1599_p6, %p1596_p5 }
 0x5e3   :  { %1604 = shalt.err (!%p1601_p7)
}
 0x5e4   :  { %1087 = dma.vmem_to_hbm [thread:$0]  %s1085_s17, 128, %s1882_s13, [#allocation4]  }
 0x5e5   :  { %1613 = dma.done.wait [#allocation4], 128  }
 0x5e6   :  { %1614 = vsyncadd [#allocation4], 4294967168 }
 0x5e7   :  { %1091 = vsyncpa [#allocation3], 1 }
 0x5e8   :  { %1092 = vsyncpa [#allocation6], 1 }
 0x5e9   :  { %1093 = vsyncpa [#allocation9], 1 }
 0x5ea   :  { %1094 = vsyncpa [#allocation12], 1 }
 0x5eb   :  { %1095 = vsyncpa [#allocation4], 1 }

</bundles_post_ra>
